<compile_context>
chip_gen: v5e
topology: v5e:2x2
jax: 0.10.0
libtpu: 0.0.40
codegen_flags: <defaults>
</compile_context>

<pallas_src>
import jax
import jax.numpy as jnp
import numpy as np
from jax import lax
from jax.experimental import pallas as pl
from jax.experimental.pallas import tpu as pltpu

N, CIN, COUT, H, W = 2, 4, 8, 16, 16
EPS = 1e-5


def _tap_offsets():
    """Union of (dh, dw) spatial offsets of the dil-1 and dil-2 3x3 kernels."""
    d1 = [(a, b) for a in (-1, 0, 1) for b in (-1, 0, 1)]
    d2 = [(a, b) for a in (-2, 0, 2) for b in (-2, 0, 2)]
    return sorted(set(d1 + d2))            # 17 taps (shared center merged)


def dilated_parallel_conv_block_d2(x_nchw, w0, w1, w2, gamma, beta, *, eps=EPS):
    f32 = jnp.float32
    n, cin, h, w = x_nchw.shape
    cout = w0.shape[0]
    lanes = w * cout                       # 128: lane j = w*cout + c
    halo = 8                               # sublane-aligned H halo (>= max dilation)
    hpad = h + 2 * halo
    offsets = _tap_offsets()
    assert w & (w - 1) == 0, "W must be a power of two for the lane-group reduce"

    # ----------------- wrapper-side layout plumbing (free XLA ops) -----------------
    # x replicated over the cout lane-group: xr[k, n*h + h_, w*cout + c] = x[n, k, h_, w]
    xr = jnp.repeat(jnp.transpose(x_nchw, (1, 0, 2, 3)).astype(f32), cout, axis=-1)
    xr = xr.reshape(cin, n * h, lanes)

    # 1x1 conv weights per input channel, same lane layout: w0rows[k, w*cout+c] = w0[c, k]
    w0m = w0.reshape(cout, cin).astype(f32)
    w0rows = jnp.tile(jnp.transpose(w0m), (1, w))                      # (cin, lanes)

    # Fused depthwise tap weights (dil-1 + dil-2, centers merged), with the W
    # zero-padding mask folded in so the in-kernel lane roll needs no select.
    w1m = w1.reshape(cout, 3, 3).astype(f32)
    w2m = w2.reshape(cout, 3, 3).astype(f32)
    wpos = np.arange(w)
    taps = []
    for dh, dw in offsets:
        wc = jnp.zeros((cout,), f32)
        if dh in (-1, 0, 1) and dw in (-1, 0, 1):
            wc = wc + w1m[:, dh + 1, dw + 1]
        if dh in (-2, 0, 2) and dw in (-2, 0, 2):
            wc = wc + w2m[:, dh // 2 + 1, dw // 2 + 1]
        valid = jnp.asarray(((wpos + dw >= 0) & (wpos + dw < w)).astype(np.float32))
        taps.append((valid[:, None] * wc[None, :]).reshape(lanes))
    tapw = jnp.stack(taps, axis=0)                                     # (17, lanes)

    gamma_vec = jnp.tile(gamma.astype(f32), (w,)).reshape(1, lanes)
    beta_vec = jnp.tile(beta.astype(f32), (w,)).reshape(1, lanes)

    # ---------------------------------- kernel ----------------------------------
    def kernel(xr_ref, w0_ref, tapw_ref, gamma_ref, beta_ref, out_ref, pad_ref):
        def lane_group_sum(v):
            # Sum the W stride-`cout` lane groups: after log2(W) roll+add steps
            # every lane holds its channel's total, already broadcast over w.
            s = cout
            while s < lanes:
                v = v + pltpu.roll(v, shift=s, axis=1)
                s *= 2
            return v

        zeros_halo = jnp.zeros((halo, lanes), jnp.float32)
        accs = []
        for img in range(n):
            base = img * hpad
            row0 = img * h

            # conv0: 1x1 pointwise conv == cin broadcast-FMAs in lane-dense layout.
            y = xr_ref[0, row0:row0 + h, :] * w0_ref[0:1, :]
            for k in range(1, cin):
                y = y + xr_ref[k, row0:row0 + h, :] * w0_ref[k:k + 1, :]

            # Zero only the halo strips (8-row aligned), then aligned interior store.
            pad_ref[base:base + halo, :] = zeros_halo
            pad_ref[base + halo + h:base + hpad, :] = zeros_halo
            pad_ref[base + halo:base + halo + h, :] = y

            # Fused depthwise (dil-1 + dil-2): 17 taps of slice / lane-roll / FMA.
            acc = jnp.zeros((h, lanes), jnp.float32)
            for t, (dh, dw) in enumerate(offsets):
                slab = pad_ref[base + halo + dh:base + halo + dh + h, :]
                if dw != 0:
                    slab = pltpu.roll(slab, shift=(-dw * cout) % lanes, axis=1)
                acc = acc + slab * tapw_ref[t:t + 1, :]
            accs.append(acc)

        # BatchNorm2d, training-mode batch statistics (two-pass, biased variance).
        # TODO(synk): running_mean/var momentum updates are stateful and not modeled
        # (they do not affect the training-mode forward output).
        count = float(n * h * w)
        rsum = jnp.zeros((1, lanes), jnp.float32)
        for img in range(n):
            rsum = rsum + jnp.sum(accs[img], axis=0, keepdims=True)
        mean = lane_group_sum(rsum) * (1.0 / count)

        sqsum = jnp.zeros((1, lanes), jnp.float32)
        centered = []
        for img in range(n):
            d = accs[img] - mean
            centered.append(d)
            sqsum = sqsum + jnp.sum(d * d, axis=0, keepdims=True)
        var = lane_group_sum(sqsum) * (1.0 / count)

        scale = lax.rsqrt(var + eps) * gamma_ref[...]
        bn_shift = beta_ref[...]
        for img in range(n):
            out_ref[img * h:(img + 1) * h, :] = centered[img] * scale + bn_shift

    out2d = pl.pallas_call(
        kernel,
        out_shape=jax.ShapeDtypeStruct((n * h, lanes), jnp.float32),
        in_specs=[pl.BlockSpec(memory_space=pltpu.MemorySpace.VMEM)] * 5,
        out_specs=pl.BlockSpec(memory_space=pltpu.MemorySpace.VMEM),
        scratch_shapes=[pltpu.VMEM((n * hpad, lanes), jnp.float32)],
    )(xr, w0rows, tapw, gamma_vec, beta_vec)

    out_nhwc = out2d.reshape(n, h, w, cout)
    return jnp.transpose(out_nhwc, (0, 3, 1, 2))                       # back to NCHW


def reference(x, w0, w1, w2, gamma, beta):
    """Plain-JAX reference matching PyTorch semantics (NCHW)."""
    dn = ('NCHW', 'OIHW', 'NCHW')
    hi = lax.Precision.HIGHEST
    y = lax.conv_general_dilated(x, w0, (1, 1), 'VALID',
                                 dimension_numbers=dn, precision=hi)
    d1 = lax.conv_general_dilated(y, w1, (1, 1), [(1, 1), (1, 1)],
                                  rhs_dilation=(1, 1),
                                  feature_group_count=w1.shape[0],
                                  dimension_numbers=dn, precision=hi)
    d2 = lax.conv_general_dilated(y, w2, (1, 1), [(2, 2), (2, 2)],
                                  rhs_dilation=(2, 2),
                                  feature_group_count=w2.shape[0],
                                  dimension_numbers=dn, precision=hi)
    s = d1 + d2
    mean = jnp.mean(s, axis=(0, 2, 3), keepdims=True)
    var = jnp.mean((s - mean) ** 2, axis=(0, 2, 3), keepdims=True)     # biased
    g = gamma.reshape(1, -1, 1, 1)
    b = beta.reshape(1, -1, 1, 1)
    return (s - mean) * lax.rsqrt(var + EPS) * g + b


if __name__ == "__main__":
    key = jax.random.PRNGKey(0)
    kx, k0, k1, k2, kg, kb = jax.random.split(key, 6)

    # deterministic synthetic parameters (shapes from the module's __init__)
    x = jax.random.normal(kx, (N, CIN, H, W), jnp.float32)
    w0 = 0.5 * jax.random.normal(k0, (COUT, CIN, 1, 1), jnp.float32)   # conv0
    w1 = 0.3 * jax.random.normal(k1, (COUT, 1, 3, 3), jnp.float32)     # conv1 (depthwise)
    w2 = 0.3 * jax.random.normal(k2, (COUT, 1, 3, 3), jnp.float32)     # conv2 (depthwise, dil=2)
    gamma = 1.0 + 0.1 * jax.random.normal(kg, (COUT,), jnp.float32)    # bn.weight
    beta = 0.1 * jax.random.normal(kb, (COUT,), jnp.float32)           # bn.bias

    out = dilated_parallel_conv_block_d2(x, w0, w1, w2, gamma, beta)
    out = jax.block_until_ready(out)

    ref = reference(x, w0, w1, w2, gamma, beta)
    assert out.shape == ref.shape == (N, COUT, H, W)
    np.testing.assert_allclose(np.asarray(out), np.asarray(ref),
                               rtol=2e-3, atol=2e-3)
    print("KERNEL_OK")
</pallas_src>

<mosaic_0001>
module attributes {stable_mosaic.version = 11 : i64} {
  func.func @kernel(%arg0: memref<4x32x128xf32, #tpu.memory_space<vmem>>, %arg1: memref<4x128xf32, #tpu.memory_space<vmem>>, %arg2: memref<17x128xf32, #tpu.memory_space<vmem>>, %arg3: memref<1x128xf32, #tpu.memory_space<vmem>>, %arg4: memref<1x128xf32, #tpu.memory_space<vmem>>, %arg5: memref<32x128xf32, #tpu.memory_space<vmem>>, %arg6: memref<64x128xf32, #tpu.memory_space<vmem>>) attributes {dimension_semantics = [], scalar_prefetch = 0 : i64, scratch_operands = 1 : i64, tpu.core_type = #tpu.core_type<tc>} {
    %cst = arith.constant 0.000000e+00 : f32
    %0 = vector.broadcast %cst : f32 to vector<8x128xf32>
    %c0 = arith.constant 0 : index
    %c0_0 = arith.constant 0 : index
    %c0_1 = arith.constant 0 : index
    %1 = vector.load %arg0[%c0, %c0_0, %c0_1] : memref<4x32x128xf32, #tpu.memory_space<vmem>>, vector<1x16x128xf32>
    %2 = vector.shape_cast %1 : vector<1x16x128xf32> to vector<16x128xf32>
    %c0_2 = arith.constant 0 : index
    %c0_3 = arith.constant 0 : index
    %3 = vector.load %arg1[%c0_2, %c0_3] : memref<4x128xf32, #tpu.memory_space<vmem>>, vector<1x128xf32>
    %4 = vector.broadcast %3 : vector<1x128xf32> to vector<16x128xf32>
    %5 = arith.mulf %2, %4 : vector<16x128xf32>
    %c1 = arith.constant 1 : index
    %c0_4 = arith.constant 0 : index
    %c0_5 = arith.constant 0 : index
    %6 = vector.load %arg0[%c1, %c0_4, %c0_5] : memref<4x32x128xf32, #tpu.memory_space<vmem>>, vector<1x16x128xf32>
    %7 = vector.shape_cast %6 : vector<1x16x128xf32> to vector<16x128xf32>
    %c1_6 = arith.constant 1 : index
    %c0_7 = arith.constant 0 : index
    %8 = vector.load %arg1[%c1_6, %c0_7] : memref<4x128xf32, #tpu.memory_space<vmem>>, vector<1x128xf32>
    %9 = vector.broadcast %8 : vector<1x128xf32> to vector<16x128xf32>
    %10 = arith.mulf %7, %9 : vector<16x128xf32>
    %11 = arith.addf %5, %10 : vector<16x128xf32>
    %c2 = arith.constant 2 : index
    %c0_8 = arith.constant 0 : index
    %c0_9 = arith.constant 0 : index
    %12 = vector.load %arg0[%c2, %c0_8, %c0_9] : memref<4x32x128xf32, #tpu.memory_space<vmem>>, vector<1x16x128xf32>
    %13 = vector.shape_cast %12 : vector<1x16x128xf32> to vector<16x128xf32>
    %c2_10 = arith.constant 2 : index
    %c0_11 = arith.constant 0 : index
    %14 = vector.load %arg1[%c2_10, %c0_11] : memref<4x128xf32, #tpu.memory_space<vmem>>, vector<1x128xf32>
    %15 = vector.broadcast %14 : vector<1x128xf32> to vector<16x128xf32>
    %16 = arith.mulf %13, %15 : vector<16x128xf32>
    %17 = arith.addf %11, %16 : vector<16x128xf32>
    %c3 = arith.constant 3 : index
    %c0_12 = arith.constant 0 : index
    %c0_13 = arith.constant 0 : index
    %18 = vector.load %arg0[%c3, %c0_12, %c0_13] : memref<4x32x128xf32, #tpu.memory_space<vmem>>, vector<1x16x128xf32>
    %19 = vector.shape_cast %18 : vector<1x16x128xf32> to vector<16x128xf32>
    %c3_14 = arith.constant 3 : index
    %c0_15 = arith.constant 0 : index
    %20 = vector.load %arg1[%c3_14, %c0_15] : memref<4x128xf32, #tpu.memory_space<vmem>>, vector<1x128xf32>
    %21 = vector.broadcast %20 : vector<1x128xf32> to vector<16x128xf32>
    %22 = arith.mulf %19, %21 : vector<16x128xf32>
    %23 = arith.addf %17, %22 : vector<16x128xf32>
    %c0_16 = arith.constant 0 : index
    %c0_17 = arith.constant 0 : index
    %24 = vector.load %arg6[%c0_16, %c0_17] : memref<64x128xf32, #tpu.memory_space<vmem>>, vector<8x128xf32>
    tpu.vector_store %arg6[%c0_16, %c0_17], %0 {strides = array<i32>} : memref<64x128xf32, #tpu.memory_space<vmem>>, vector<8x128xf32>,
    %c24 = arith.constant 24 : index
    %c0_18 = arith.constant 0 : index
    %25 = vector.load %arg6[%c24, %c0_18] : memref<64x128xf32, #tpu.memory_space<vmem>>, vector<8x128xf32>
    tpu.vector_store %arg6[%c24, %c0_18], %0 {strides = array<i32>} : memref<64x128xf32, #tpu.memory_space<vmem>>, vector<8x128xf32>,
    %c8 = arith.constant 8 : index
    %c0_19 = arith.constant 0 : index
    %26 = vector.load %arg6[%c8, %c0_19] : memref<64x128xf32, #tpu.memory_space<vmem>>, vector<16x128xf32>
    tpu.vector_store %arg6[%c8, %c0_19], %23 {strides = array<i32>} : memref<64x128xf32, #tpu.memory_space<vmem>>, vector<16x128xf32>,
    %cst_20 = arith.constant 0.000000e+00 : f32
    %27 = vector.broadcast %cst_20 : f32 to vector<16x128xf32>
    %c6 = arith.constant 6 : index
    %c0_21 = arith.constant 0 : index
    %28 = vector.load %arg6[%c6, %c0_21] : memref<64x128xf32, #tpu.memory_space<vmem>>, vector<16x128xf32>
    %c16_i32 = arith.constant 16 : i32
    %29 = tpu.dynamic_rotate %28 by %c16_i32 dim 1 : vector<16x128xf32>, i32 -> vector<16x128xf32>
    %c0_22 = arith.constant 0 : index
    %c0_23 = arith.constant 0 : index
    %30 = vector.load %arg2[%c0_22, %c0_23] : memref<17x128xf32, #tpu.memory_space<vmem>>, vector<1x128xf32>
    %31 = vector.broadcast %30 : vector<1x128xf32> to vector<16x128xf32>
    %32 = arith.mulf %29, %31 : vector<16x128xf32>
    %33 = arith.addf %27, %32 : vector<16x128xf32>
    %c6_24 = arith.constant 6 : index
    %c0_25 = arith.constant 0 : index
    %34 = vector.load %arg6[%c6_24, %c0_25] : memref<64x128xf32, #tpu.memory_space<vmem>>, vector<16x128xf32>
    %c1_26 = arith.constant 1 : index
    %c0_27 = arith.constant 0 : index
    %35 = vector.load %arg2[%c1_26, %c0_27] : memref<17x128xf32, #tpu.memory_space<vmem>>, vector<1x128xf32>
    %36 = vector.broadcast %35 : vector<1x128xf32> to vector<16x128xf32>
    %37 = arith.mulf %34, %36 : vector<16x128xf32>
    %38 = arith.addf %33, %37 : vector<16x128xf32>
    %c6_28 = arith.constant 6 : index
    %c0_29 = arith.constant 0 : index
    %39 = vector.load %arg6[%c6_28, %c0_29] : memref<64x128xf32, #tpu.memory_space<vmem>>, vector<16x128xf32>
    %c112_i32 = arith.constant 112 : i32
    %40 = tpu.dynamic_rotate %39 by %c112_i32 dim 1 : vector<16x128xf32>, i32 -> vector<16x128xf32>
    %c2_30 = arith.constant 2 : index
    %c0_31 = arith.constant 0 : index
    %41 = vector.load %arg2[%c2_30, %c0_31] : memref<17x128xf32, #tpu.memory_space<vmem>>, vector<1x128xf32>
    %42 = vector.broadcast %41 : vector<1x128xf32> to vector<16x128xf32>
    %43 = arith.mulf %40, %42 : vector<16x128xf32>
    %44 = arith.addf %38, %43 : vector<16x128xf32>
    %c7 = arith.constant 7 : index
    %c0_32 = arith.constant 0 : index
    %45 = vector.load %arg6[%c7, %c0_32] : memref<64x128xf32, #tpu.memory_space<vmem>>, vector<16x128xf32>
    %c8_i32 = arith.constant 8 : i32
    %46 = tpu.dynamic_rotate %45 by %c8_i32 dim 1 : vector<16x128xf32>, i32 -> vector<16x128xf32>
    %c3_33 = arith.constant 3 : index
    %c0_34 = arith.constant 0 : index
    %47 = vector.load %arg2[%c3_33, %c0_34] : memref<17x128xf32, #tpu.memory_space<vmem>>, vector<1x128xf32>
    %48 = vector.broadcast %47 : vector<1x128xf32> to vector<16x128xf32>
    %49 = arith.mulf %46, %48 : vector<16x128xf32>
    %50 = arith.addf %44, %49 : vector<16x128xf32>
    %c7_35 = arith.constant 7 : index
    %c0_36 = arith.constant 0 : index
    %51 = vector.load %arg6[%c7_35, %c0_36] : memref<64x128xf32, #tpu.memory_space<vmem>>, vector<16x128xf32>
    %c4 = arith.constant 4 : index
    %c0_37 = arith.constant 0 : index
    %52 = vector.load %arg2[%c4, %c0_37] : memref<17x128xf32, #tpu.memory_space<vmem>>, vector<1x128xf32>
    %53 = vector.broadcast %52 : vector<1x128xf32> to vector<16x128xf32>
    %54 = arith.mulf %51, %53 : vector<16x128xf32>
    %55 = arith.addf %50, %54 : vector<16x128xf32>
    %c7_38 = arith.constant 7 : index
    %c0_39 = arith.constant 0 : index
    %56 = vector.load %arg6[%c7_38, %c0_39] : memref<64x128xf32, #tpu.memory_space<vmem>>, vector<16x128xf32>
    %c120_i32 = arith.constant 120 : i32
    %57 = tpu.dynamic_rotate %56 by %c120_i32 dim 1 : vector<16x128xf32>, i32 -> vector<16x128xf32>
    %c5 = arith.constant 5 : index
    %c0_40 = arith.constant 0 : index
    %58 = vector.load %arg2[%c5, %c0_40] : memref<17x128xf32, #tpu.memory_space<vmem>>, vector<1x128xf32>
    %59 = vector.broadcast %58 : vector<1x128xf32> to vector<16x128xf32>
    %60 = arith.mulf %57, %59 : vector<16x128xf32>
    %61 = arith.addf %55, %60 : vector<16x128xf32>
    %c8_41 = arith.constant 8 : index
    %c0_42 = arith.constant 0 : index
    %62 = vector.load %arg6[%c8_41, %c0_42] : memref<64x128xf32, #tpu.memory_space<vmem>>, vector<16x128xf32>
    %c16_i32_43 = arith.constant 16 : i32
    %63 = tpu.dynamic_rotate %62 by %c16_i32_43 dim 1 : vector<16x128xf32>, i32 -> vector<16x128xf32>
    %c6_44 = arith.constant 6 : index
    %c0_45 = arith.constant 0 : index
    %64 = vector.load %arg2[%c6_44, %c0_45] : memref<17x128xf32, #tpu.memory_space<vmem>>, vector<1x128xf32>
    %65 = vector.broadcast %64 : vector<1x128xf32> to vector<16x128xf32>
    %66 = arith.mulf %63, %65 : vector<16x128xf32>
    %67 = arith.addf %61, %66 : vector<16x128xf32>
    %c8_46 = arith.constant 8 : index
    %c0_47 = arith.constant 0 : index
    %68 = vector.load %arg6[%c8_46, %c0_47] : memref<64x128xf32, #tpu.memory_space<vmem>>, vector<16x128xf32>
    %c8_i32_48 = arith.constant 8 : i32
    %69 = tpu.dynamic_rotate %68 by %c8_i32_48 dim 1 : vector<16x128xf32>, i32 -> vector<16x128xf32>
    %c7_49 = arith.constant 7 : index
    %c0_50 = arith.constant 0 : index
    %70 = vector.load %arg2[%c7_49, %c0_50] : memref<17x128xf32, #tpu.memory_space<vmem>>, vector<1x128xf32>
    %71 = vector.broadcast %70 : vector<1x128xf32> to vector<16x128xf32>
    %72 = arith.mulf %69, %71 : vector<16x128xf32>
    %73 = arith.addf %67, %72 : vector<16x128xf32>
    %c8_51 = arith.constant 8 : index
    %c0_52 = arith.constant 0 : index
    %74 = vector.load %arg6[%c8_51, %c0_52] : memref<64x128xf32, #tpu.memory_space<vmem>>, vector<16x128xf32>
    %c8_53 = arith.constant 8 : index
    %c0_54 = arith.constant 0 : index
    %75 = vector.load %arg2[%c8_53, %c0_54] : memref<17x128xf32, #tpu.memory_space<vmem>>, vector<1x128xf32>
    %76 = vector.broadcast %75 : vector<1x128xf32> to vector<16x128xf32>
    %77 = arith.mulf %74, %76 : vector<16x128xf32>
    %78 = arith.addf %73, %77 : vector<16x128xf32>
    %c8_55 = arith.constant 8 : index
    %c0_56 = arith.constant 0 : index
    %79 = vector.load %arg6[%c8_55, %c0_56] : memref<64x128xf32, #tpu.memory_space<vmem>>, vector<16x128xf32>
    %c120_i32_57 = arith.constant 120 : i32
    %80 = tpu.dynamic_rotate %79 by %c120_i32_57 dim 1 : vector<16x128xf32>, i32 -> vector<16x128xf32>
    %c9 = arith.constant 9 : index
    %c0_58 = arith.constant 0 : index
    %81 = vector.load %arg2[%c9, %c0_58] : memref<17x128xf32, #tpu.memory_space<vmem>>, vector<1x128xf32>
    %82 = vector.broadcast %81 : vector<1x128xf32> to vector<16x128xf32>
    %83 = arith.mulf %80, %82 : vector<16x128xf32>
    %84 = arith.addf %78, %83 : vector<16x128xf32>
    %c8_59 = arith.constant 8 : index
    %c0_60 = arith.constant 0 : index
    %85 = vector.load %arg6[%c8_59, %c0_60] : memref<64x128xf32, #tpu.memory_space<vmem>>, vector<16x128xf32>
    %c112_i32_61 = arith.constant 112 : i32
    %86 = tpu.dynamic_rotate %85 by %c112_i32_61 dim 1 : vector<16x128xf32>, i32 -> vector<16x128xf32>
    %c10 = arith.constant 10 : index
    %c0_62 = arith.constant 0 : index
    %87 = vector.load %arg2[%c10, %c0_62] : memref<17x128xf32, #tpu.memory_space<vmem>>, vector<1x128xf32>
    %88 = vector.broadcast %87 : vector<1x128xf32> to vector<16x128xf32>
    %89 = arith.mulf %86, %88 : vector<16x128xf32>
    %90 = arith.addf %84, %89 : vector<16x128xf32>
    %c9_63 = arith.constant 9 : index
    %c0_64 = arith.constant 0 : index
    %91 = vector.load %arg6[%c9_63, %c0_64] : memref<64x128xf32, #tpu.memory_space<vmem>>, vector<16x128xf32>
    %c8_i32_65 = arith.constant 8 : i32
    %92 = tpu.dynamic_rotate %91 by %c8_i32_65 dim 1 : vector<16x128xf32>, i32 -> vector<16x128xf32>
    %c11 = arith.constant 11 : index
    %c0_66 = arith.constant 0 : index
    %93 = vector.load %arg2[%c11, %c0_66] : memref<17x128xf32, #tpu.memory_space<vmem>>, vector<1x128xf32>
    %94 = vector.broadcast %93 : vector<1x128xf32> to vector<16x128xf32>
    %95 = arith.mulf %92, %94 : vector<16x128xf32>
    %96 = arith.addf %90, %95 : vector<16x128xf32>
    %c9_67 = arith.constant 9 : index
    %c0_68 = arith.constant 0 : index
    %97 = vector.load %arg6[%c9_67, %c0_68] : memref<64x128xf32, #tpu.memory_space<vmem>>, vector<16x128xf32>
    %c12 = arith.constant 12 : index
    %c0_69 = arith.constant 0 : index
    %98 = vector.load %arg2[%c12, %c0_69] : memref<17x128xf32, #tpu.memory_space<vmem>>, vector<1x128xf32>
    %99 = vector.broadcast %98 : vector<1x128xf32> to vector<16x128xf32>
    %100 = arith.mulf %97, %99 : vector<16x128xf32>
    %101 = arith.addf %96, %100 : vector<16x128xf32>
    %c9_70 = arith.constant 9 : index
    %c0_71 = arith.constant 0 : index
    %102 = vector.load %arg6[%c9_70, %c0_71] : memref<64x128xf32, #tpu.memory_space<vmem>>, vector<16x128xf32>
    %c120_i32_72 = arith.constant 120 : i32
    %103 = tpu.dynamic_rotate %102 by %c120_i32_72 dim 1 : vector<16x128xf32>, i32 -> vector<16x128xf32>
    %c13 = arith.constant 13 : index
    %c0_73 = arith.constant 0 : index
    %104 = vector.load %arg2[%c13, %c0_73] : memref<17x128xf32, #tpu.memory_space<vmem>>, vector<1x128xf32>
    %105 = vector.broadcast %104 : vector<1x128xf32> to vector<16x128xf32>
    %106 = arith.mulf %103, %105 : vector<16x128xf32>
    %107 = arith.addf %101, %106 : vector<16x128xf32>
    %c10_74 = arith.constant 10 : index
    %c0_75 = arith.constant 0 : index
    %108 = vector.load %arg6[%c10_74, %c0_75] : memref<64x128xf32, #tpu.memory_space<vmem>>, vector<16x128xf32>
    %c16_i32_76 = arith.constant 16 : i32
    %109 = tpu.dynamic_rotate %108 by %c16_i32_76 dim 1 : vector<16x128xf32>, i32 -> vector<16x128xf32>
    %c14 = arith.constant 14 : index
    %c0_77 = arith.constant 0 : index
    %110 = vector.load %arg2[%c14, %c0_77] : memref<17x128xf32, #tpu.memory_space<vmem>>, vector<1x128xf32>
    %111 = vector.broadcast %110 : vector<1x128xf32> to vector<16x128xf32>
    %112 = arith.mulf %109, %111 : vector<16x128xf32>
    %113 = arith.addf %107, %112 : vector<16x128xf32>
    %c10_78 = arith.constant 10 : index
    %c0_79 = arith.constant 0 : index
    %114 = vector.load %arg6[%c10_78, %c0_79] : memref<64x128xf32, #tpu.memory_space<vmem>>, vector<16x128xf32>
    %c15 = arith.constant 15 : index
    %c0_80 = arith.constant 0 : index
    %115 = vector.load %arg2[%c15, %c0_80] : memref<17x128xf32, #tpu.memory_space<vmem>>, vector<1x128xf32>
    %116 = vector.broadcast %115 : vector<1x128xf32> to vector<16x128xf32>
    %117 = arith.mulf %114, %116 : vector<16x128xf32>
    %118 = arith.addf %113, %117 : vector<16x128xf32>
    %c10_81 = arith.constant 10 : index
    %c0_82 = arith.constant 0 : index
    %119 = vector.load %arg6[%c10_81, %c0_82] : memref<64x128xf32, #tpu.memory_space<vmem>>, vector<16x128xf32>
    %c112_i32_83 = arith.constant 112 : i32
    %120 = tpu.dynamic_rotate %119 by %c112_i32_83 dim 1 : vector<16x128xf32>, i32 -> vector<16x128xf32>
    %c16 = arith.constant 16 : index
    %c0_84 = arith.constant 0 : index
    %121 = vector.load %arg2[%c16, %c0_84] : memref<17x128xf32, #tpu.memory_space<vmem>>, vector<1x128xf32>
    %122 = vector.broadcast %121 : vector<1x128xf32> to vector<16x128xf32>
    %123 = arith.mulf %120, %122 : vector<16x128xf32>
    %124 = arith.addf %118, %123 : vector<16x128xf32>
    %c0_85 = arith.constant 0 : index
    %c16_86 = arith.constant 16 : index
    %c0_87 = arith.constant 0 : index
    %125 = vector.load %arg0[%c0_85, %c16_86, %c0_87] : memref<4x32x128xf32, #tpu.memory_space<vmem>>, vector<1x16x128xf32>
    %126 = vector.shape_cast %125 : vector<1x16x128xf32> to vector<16x128xf32>
    %c0_88 = arith.constant 0 : index
    %c0_89 = arith.constant 0 : index
    %127 = vector.load %arg1[%c0_88, %c0_89] : memref<4x128xf32, #tpu.memory_space<vmem>>, vector<1x128xf32>
    %128 = vector.broadcast %127 : vector<1x128xf32> to vector<16x128xf32>
    %129 = arith.mulf %126, %128 : vector<16x128xf32>
    %c1_90 = arith.constant 1 : index
    %c16_91 = arith.constant 16 : index
    %c0_92 = arith.constant 0 : index
    %130 = vector.load %arg0[%c1_90, %c16_91, %c0_92] : memref<4x32x128xf32, #tpu.memory_space<vmem>>, vector<1x16x128xf32>
    %131 = vector.shape_cast %130 : vector<1x16x128xf32> to vector<16x128xf32>
    %c1_93 = arith.constant 1 : index
    %c0_94 = arith.constant 0 : index
    %132 = vector.load %arg1[%c1_93, %c0_94] : memref<4x128xf32, #tpu.memory_space<vmem>>, vector<1x128xf32>
    %133 = vector.broadcast %132 : vector<1x128xf32> to vector<16x128xf32>
    %134 = arith.mulf %131, %133 : vector<16x128xf32>
    %135 = arith.addf %129, %134 : vector<16x128xf32>
    %c2_95 = arith.constant 2 : index
    %c16_96 = arith.constant 16 : index
    %c0_97 = arith.constant 0 : index
    %136 = vector.load %arg0[%c2_95, %c16_96, %c0_97] : memref<4x32x128xf32, #tpu.memory_space<vmem>>, vector<1x16x128xf32>
    %137 = vector.shape_cast %136 : vector<1x16x128xf32> to vector<16x128xf32>
    %c2_98 = arith.constant 2 : index
    %c0_99 = arith.constant 0 : index
    %138 = vector.load %arg1[%c2_98, %c0_99] : memref<4x128xf32, #tpu.memory_space<vmem>>, vector<1x128xf32>
    %139 = vector.broadcast %138 : vector<1x128xf32> to vector<16x128xf32>
    %140 = arith.mulf %137, %139 : vector<16x128xf32>
    %141 = arith.addf %135, %140 : vector<16x128xf32>
    %c3_100 = arith.constant 3 : index
    %c16_101 = arith.constant 16 : index
    %c0_102 = arith.constant 0 : index
    %142 = vector.load %arg0[%c3_100, %c16_101, %c0_102] : memref<4x32x128xf32, #tpu.memory_space<vmem>>, vector<1x16x128xf32>
    %143 = vector.shape_cast %142 : vector<1x16x128xf32> to vector<16x128xf32>
    %c3_103 = arith.constant 3 : index
    %c0_104 = arith.constant 0 : index
    %144 = vector.load %arg1[%c3_103, %c0_104] : memref<4x128xf32, #tpu.memory_space<vmem>>, vector<1x128xf32>
    %145 = vector.broadcast %144 : vector<1x128xf32> to vector<16x128xf32>
    %146 = arith.mulf %143, %145 : vector<16x128xf32>
    %147 = arith.addf %141, %146 : vector<16x128xf32>
    %c32 = arith.constant 32 : index
    %c0_105 = arith.constant 0 : index
    %148 = vector.load %arg6[%c32, %c0_105] : memref<64x128xf32, #tpu.memory_space<vmem>>, vector<8x128xf32>
    tpu.vector_store %arg6[%c32, %c0_105], %0 {strides = array<i32>} : memref<64x128xf32, #tpu.memory_space<vmem>>, vector<8x128xf32>,
    %c56 = arith.constant 56 : index
    %c0_106 = arith.constant 0 : index
    %149 = vector.load %arg6[%c56, %c0_106] : memref<64x128xf32, #tpu.memory_space<vmem>>, vector<8x128xf32>
    tpu.vector_store %arg6[%c56, %c0_106], %0 {strides = array<i32>} : memref<64x128xf32, #tpu.memory_space<vmem>>, vector<8x128xf32>,
    %c40 = arith.constant 40 : index
    %c0_107 = arith.constant 0 : index
    %150 = vector.load %arg6[%c40, %c0_107] : memref<64x128xf32, #tpu.memory_space<vmem>>, vector<16x128xf32>
    tpu.vector_store %arg6[%c40, %c0_107], %147 {strides = array<i32>} : memref<64x128xf32, #tpu.memory_space<vmem>>, vector<16x128xf32>,
    %cst_108 = arith.constant 0.000000e+00 : f32
    %151 = vector.broadcast %cst_108 : f32 to vector<16x128xf32>
    %c38 = arith.constant 38 : index
    %c0_109 = arith.constant 0 : index
    %152 = vector.load %arg6[%c38, %c0_109] : memref<64x128xf32, #tpu.memory_space<vmem>>, vector<16x128xf32>
    %c16_i32_110 = arith.constant 16 : i32
    %153 = tpu.dynamic_rotate %152 by %c16_i32_110 dim 1 : vector<16x128xf32>, i32 -> vector<16x128xf32>
    %c0_111 = arith.constant 0 : index
    %c0_112 = arith.constant 0 : index
    %154 = vector.load %arg2[%c0_111, %c0_112] : memref<17x128xf32, #tpu.memory_space<vmem>>, vector<1x128xf32>
    %155 = vector.broadcast %154 : vector<1x128xf32> to vector<16x128xf32>
    %156 = arith.mulf %153, %155 : vector<16x128xf32>
    %157 = arith.addf %151, %156 : vector<16x128xf32>
    %c38_113 = arith.constant 38 : index
    %c0_114 = arith.constant 0 : index
    %158 = vector.load %arg6[%c38_113, %c0_114] : memref<64x128xf32, #tpu.memory_space<vmem>>, vector<16x128xf32>
    %c1_115 = arith.constant 1 : index
    %c0_116 = arith.constant 0 : index
    %159 = vector.load %arg2[%c1_115, %c0_116] : memref<17x128xf32, #tpu.memory_space<vmem>>, vector<1x128xf32>
    %160 = vector.broadcast %159 : vector<1x128xf32> to vector<16x128xf32>
    %161 = arith.mulf %158, %160 : vector<16x128xf32>
    %162 = arith.addf %157, %161 : vector<16x128xf32>
    %c38_117 = arith.constant 38 : index
    %c0_118 = arith.constant 0 : index
    %163 = vector.load %arg6[%c38_117, %c0_118] : memref<64x128xf32, #tpu.memory_space<vmem>>, vector<16x128xf32>
    %c112_i32_119 = arith.constant 112 : i32
    %164 = tpu.dynamic_rotate %163 by %c112_i32_119 dim 1 : vector<16x128xf32>, i32 -> vector<16x128xf32>
    %c2_120 = arith.constant 2 : index
    %c0_121 = arith.constant 0 : index
    %165 = vector.load %arg2[%c2_120, %c0_121] : memref<17x128xf32, #tpu.memory_space<vmem>>, vector<1x128xf32>
    %166 = vector.broadcast %165 : vector<1x128xf32> to vector<16x128xf32>
    %167 = arith.mulf %164, %166 : vector<16x128xf32>
    %168 = arith.addf %162, %167 : vector<16x128xf32>
    %c39 = arith.constant 39 : index
    %c0_122 = arith.constant 0 : index
    %169 = vector.load %arg6[%c39, %c0_122] : memref<64x128xf32, #tpu.memory_space<vmem>>, vector<16x128xf32>
    %c8_i32_123 = arith.constant 8 : i32
    %170 = tpu.dynamic_rotate %169 by %c8_i32_123 dim 1 : vector<16x128xf32>, i32 -> vector<16x128xf32>
    %c3_124 = arith.constant 3 : index
    %c0_125 = arith.constant 0 : index
    %171 = vector.load %arg2[%c3_124, %c0_125] : memref<17x128xf32, #tpu.memory_space<vmem>>, vector<1x128xf32>
    %172 = vector.broadcast %171 : vector<1x128xf32> to vector<16x128xf32>
    %173 = arith.mulf %170, %172 : vector<16x128xf32>
    %174 = arith.addf %168, %173 : vector<16x128xf32>
    %c39_126 = arith.constant 39 : index
    %c0_127 = arith.constant 0 : index
    %175 = vector.load %arg6[%c39_126, %c0_127] : memref<64x128xf32, #tpu.memory_space<vmem>>, vector<16x128xf32>
    %c4_128 = arith.constant 4 : index
    %c0_129 = arith.constant 0 : index
    %176 = vector.load %arg2[%c4_128, %c0_129] : memref<17x128xf32, #tpu.memory_space<vmem>>, vector<1x128xf32>
    %177 = vector.broadcast %176 : vector<1x128xf32> to vector<16x128xf32>
    %178 = arith.mulf %175, %177 : vector<16x128xf32>
    %179 = arith.addf %174, %178 : vector<16x128xf32>
    %c39_130 = arith.constant 39 : index
    %c0_131 = arith.constant 0 : index
    %180 = vector.load %arg6[%c39_130, %c0_131] : memref<64x128xf32, #tpu.memory_space<vmem>>, vector<16x128xf32>
    %c120_i32_132 = arith.constant 120 : i32
    %181 = tpu.dynamic_rotate %180 by %c120_i32_132 dim 1 : vector<16x128xf32>, i32 -> vector<16x128xf32>
    %c5_133 = arith.constant 5 : index
    %c0_134 = arith.constant 0 : index
    %182 = vector.load %arg2[%c5_133, %c0_134] : memref<17x128xf32, #tpu.memory_space<vmem>>, vector<1x128xf32>
    %183 = vector.broadcast %182 : vector<1x128xf32> to vector<16x128xf32>
    %184 = arith.mulf %181, %183 : vector<16x128xf32>
    %185 = arith.addf %179, %184 : vector<16x128xf32>
    %c40_135 = arith.constant 40 : index
    %c0_136 = arith.constant 0 : index
    %186 = vector.load %arg6[%c40_135, %c0_136] : memref<64x128xf32, #tpu.memory_space<vmem>>, vector<16x128xf32>
    %c16_i32_137 = arith.constant 16 : i32
    %187 = tpu.dynamic_rotate %186 by %c16_i32_137 dim 1 : vector<16x128xf32>, i32 -> vector<16x128xf32>
    %c6_138 = arith.constant 6 : index
    %c0_139 = arith.constant 0 : index
    %188 = vector.load %arg2[%c6_138, %c0_139] : memref<17x128xf32, #tpu.memory_space<vmem>>, vector<1x128xf32>
    %189 = vector.broadcast %188 : vector<1x128xf32> to vector<16x128xf32>
    %190 = arith.mulf %187, %189 : vector<16x128xf32>
    %191 = arith.addf %185, %190 : vector<16x128xf32>
    %c40_140 = arith.constant 40 : index
    %c0_141 = arith.constant 0 : index
    %192 = vector.load %arg6[%c40_140, %c0_141] : memref<64x128xf32, #tpu.memory_space<vmem>>, vector<16x128xf32>
    %c8_i32_142 = arith.constant 8 : i32
    %193 = tpu.dynamic_rotate %192 by %c8_i32_142 dim 1 : vector<16x128xf32>, i32 -> vector<16x128xf32>
    %c7_143 = arith.constant 7 : index
    %c0_144 = arith.constant 0 : index
    %194 = vector.load %arg2[%c7_143, %c0_144] : memref<17x128xf32, #tpu.memory_space<vmem>>, vector<1x128xf32>
    %195 = vector.broadcast %194 : vector<1x128xf32> to vector<16x128xf32>
    %196 = arith.mulf %193, %195 : vector<16x128xf32>
    %197 = arith.addf %191, %196 : vector<16x128xf32>
    %c40_145 = arith.constant 40 : index
    %c0_146 = arith.constant 0 : index
    %198 = vector.load %arg6[%c40_145, %c0_146] : memref<64x128xf32, #tpu.memory_space<vmem>>, vector<16x128xf32>
    %c8_147 = arith.constant 8 : index
    %c0_148 = arith.constant 0 : index
    %199 = vector.load %arg2[%c8_147, %c0_148] : memref<17x128xf32, #tpu.memory_space<vmem>>, vector<1x128xf32>
    %200 = vector.broadcast %199 : vector<1x128xf32> to vector<16x128xf32>
    %201 = arith.mulf %198, %200 : vector<16x128xf32>
    %202 = arith.addf %197, %201 : vector<16x128xf32>
    %c40_149 = arith.constant 40 : index
    %c0_150 = arith.constant 0 : index
    %203 = vector.load %arg6[%c40_149, %c0_150] : memref<64x128xf32, #tpu.memory_space<vmem>>, vector<16x128xf32>
    %c120_i32_151 = arith.constant 120 : i32
    %204 = tpu.dynamic_rotate %203 by %c120_i32_151 dim 1 : vector<16x128xf32>, i32 -> vector<16x128xf32>
    %c9_152 = arith.constant 9 : index
    %c0_153 = arith.constant 0 : index
    %205 = vector.load %arg2[%c9_152, %c0_153] : memref<17x128xf32, #tpu.memory_space<vmem>>, vector<1x128xf32>
    %206 = vector.broadcast %205 : vector<1x128xf32> to vector<16x128xf32>
    %207 = arith.mulf %204, %206 : vector<16x128xf32>
    %208 = arith.addf %202, %207 : vector<16x128xf32>
    %c40_154 = arith.constant 40 : index
    %c0_155 = arith.constant 0 : index
    %209 = vector.load %arg6[%c40_154, %c0_155] : memref<64x128xf32, #tpu.memory_space<vmem>>, vector<16x128xf32>
    %c112_i32_156 = arith.constant 112 : i32
    %210 = tpu.dynamic_rotate %209 by %c112_i32_156 dim 1 : vector<16x128xf32>, i32 -> vector<16x128xf32>
    %c10_157 = arith.constant 10 : index
    %c0_158 = arith.constant 0 : index
    %211 = vector.load %arg2[%c10_157, %c0_158] : memref<17x128xf32, #tpu.memory_space<vmem>>, vector<1x128xf32>
    %212 = vector.broadcast %211 : vector<1x128xf32> to vector<16x128xf32>
    %213 = arith.mulf %210, %212 : vector<16x128xf32>
    %214 = arith.addf %208, %213 : vector<16x128xf32>
    %c41 = arith.constant 41 : index
    %c0_159 = arith.constant 0 : index
    %215 = vector.load %arg6[%c41, %c0_159] : memref<64x128xf32, #tpu.memory_space<vmem>>, vector<16x128xf32>
    %c8_i32_160 = arith.constant 8 : i32
    %216 = tpu.dynamic_rotate %215 by %c8_i32_160 dim 1 : vector<16x128xf32>, i32 -> vector<16x128xf32>
    %c11_161 = arith.constant 11 : index
    %c0_162 = arith.constant 0 : index
    %217 = vector.load %arg2[%c11_161, %c0_162] : memref<17x128xf32, #tpu.memory_space<vmem>>, vector<1x128xf32>
    %218 = vector.broadcast %217 : vector<1x128xf32> to vector<16x128xf32>
    %219 = arith.mulf %216, %218 : vector<16x128xf32>
    %220 = arith.addf %214, %219 : vector<16x128xf32>
    %c41_163 = arith.constant 41 : index
    %c0_164 = arith.constant 0 : index
    %221 = vector.load %arg6[%c41_163, %c0_164] : memref<64x128xf32, #tpu.memory_space<vmem>>, vector<16x128xf32>
    %c12_165 = arith.constant 12 : index
    %c0_166 = arith.constant 0 : index
    %222 = vector.load %arg2[%c12_165, %c0_166] : memref<17x128xf32, #tpu.memory_space<vmem>>, vector<1x128xf32>
    %223 = vector.broadcast %222 : vector<1x128xf32> to vector<16x128xf32>
    %224 = arith.mulf %221, %223 : vector<16x128xf32>
    %225 = arith.addf %220, %224 : vector<16x128xf32>
    %c41_167 = arith.constant 41 : index
    %c0_168 = arith.constant 0 : index
    %226 = vector.load %arg6[%c41_167, %c0_168] : memref<64x128xf32, #tpu.memory_space<vmem>>, vector<16x128xf32>
    %c120_i32_169 = arith.constant 120 : i32
    %227 = tpu.dynamic_rotate %226 by %c120_i32_169 dim 1 : vector<16x128xf32>, i32 -> vector<16x128xf32>
    %c13_170 = arith.constant 13 : index
    %c0_171 = arith.constant 0 : index
    %228 = vector.load %arg2[%c13_170, %c0_171] : memref<17x128xf32, #tpu.memory_space<vmem>>, vector<1x128xf32>
    %229 = vector.broadcast %228 : vector<1x128xf32> to vector<16x128xf32>
    %230 = arith.mulf %227, %229 : vector<16x128xf32>
    %231 = arith.addf %225, %230 : vector<16x128xf32>
    %c42 = arith.constant 42 : index
    %c0_172 = arith.constant 0 : index
    %232 = vector.load %arg6[%c42, %c0_172] : memref<64x128xf32, #tpu.memory_space<vmem>>, vector<16x128xf32>
    %c16_i32_173 = arith.constant 16 : i32
    %233 = tpu.dynamic_rotate %232 by %c16_i32_173 dim 1 : vector<16x128xf32>, i32 -> vector<16x128xf32>
    %c14_174 = arith.constant 14 : index
    %c0_175 = arith.constant 0 : index
    %234 = vector.load %arg2[%c14_174, %c0_175] : memref<17x128xf32, #tpu.memory_space<vmem>>, vector<1x128xf32>
    %235 = vector.broadcast %234 : vector<1x128xf32> to vector<16x128xf32>
    %236 = arith.mulf %233, %235 : vector<16x128xf32>
    %237 = arith.addf %231, %236 : vector<16x128xf32>
    %c42_176 = arith.constant 42 : index
    %c0_177 = arith.constant 0 : index
    %238 = vector.load %arg6[%c42_176, %c0_177] : memref<64x128xf32, #tpu.memory_space<vmem>>, vector<16x128xf32>
    %c15_178 = arith.constant 15 : index
    %c0_179 = arith.constant 0 : index
    %239 = vector.load %arg2[%c15_178, %c0_179] : memref<17x128xf32, #tpu.memory_space<vmem>>, vector<1x128xf32>
    %240 = vector.broadcast %239 : vector<1x128xf32> to vector<16x128xf32>
    %241 = arith.mulf %238, %240 : vector<16x128xf32>
    %242 = arith.addf %237, %241 : vector<16x128xf32>
    %c42_180 = arith.constant 42 : index
    %c0_181 = arith.constant 0 : index
    %243 = vector.load %arg6[%c42_180, %c0_181] : memref<64x128xf32, #tpu.memory_space<vmem>>, vector<16x128xf32>
    %c112_i32_182 = arith.constant 112 : i32
    %244 = tpu.dynamic_rotate %243 by %c112_i32_182 dim 1 : vector<16x128xf32>, i32 -> vector<16x128xf32>
    %c16_183 = arith.constant 16 : index
    %c0_184 = arith.constant 0 : index
    %245 = vector.load %arg2[%c16_183, %c0_184] : memref<17x128xf32, #tpu.memory_space<vmem>>, vector<1x128xf32>
    %246 = vector.broadcast %245 : vector<1x128xf32> to vector<16x128xf32>
    %247 = arith.mulf %244, %246 : vector<16x128xf32>
    %248 = arith.addf %242, %247 : vector<16x128xf32>
    %cst_185 = arith.constant 0.000000e+00 : f32
    %249 = vector.broadcast %cst_185 : f32 to vector<1x128xf32>
    %cst_186 = arith.constant dense<0.000000e+00> : vector<128xf32>
    %250 = vector.multi_reduction <add>, %124, %cst_186 [0] : vector<16x128xf32> to vector<128xf32>
    %251 = vector.shape_cast %250 : vector<128xf32> to vector<1x128xf32>
    %252 = arith.addf %249, %251 : vector<1x128xf32>
    %cst_187 = arith.constant dense<0.000000e+00> : vector<128xf32>
    %253 = vector.multi_reduction <add>, %248, %cst_187 [0] : vector<16x128xf32> to vector<128xf32>
    %254 = vector.shape_cast %253 : vector<128xf32> to vector<1x128xf32>
    %255 = arith.addf %252, %254 : vector<1x128xf32>
    %c8_i32_188 = arith.constant 8 : i32
    %256 = tpu.dynamic_rotate %255 by %c8_i32_188 dim 1 : vector<1x128xf32>, i32 -> vector<1x128xf32>
    %257 = arith.addf %255, %256 : vector<1x128xf32>
    %c16_i32_189 = arith.constant 16 : i32
    %258 = tpu.dynamic_rotate %257 by %c16_i32_189 dim 1 : vector<1x128xf32>, i32 -> vector<1x128xf32>
    %259 = arith.addf %257, %258 : vector<1x128xf32>
    %c32_i32 = arith.constant 32 : i32
    %260 = tpu.dynamic_rotate %259 by %c32_i32 dim 1 : vector<1x128xf32>, i32 -> vector<1x128xf32>
    %261 = arith.addf %259, %260 : vector<1x128xf32>
    %c64_i32 = arith.constant 64 : i32
    %262 = tpu.dynamic_rotate %261 by %c64_i32 dim 1 : vector<1x128xf32>, i32 -> vector<1x128xf32>
    %263 = arith.addf %261, %262 : vector<1x128xf32>
    %cst_190 = arith.constant 0.001953125 : f32
    %264 = vector.broadcast %cst_190 : f32 to vector<1x128xf32>
    %265 = arith.mulf %263, %264 : vector<1x128xf32>
    %cst_191 = arith.constant 0.000000e+00 : f32
    %266 = vector.broadcast %cst_191 : f32 to vector<1x128xf32>
    %267 = vector.broadcast %265 : vector<1x128xf32> to vector<16x128xf32>
    %268 = arith.subf %124, %267 : vector<16x128xf32>
    %269 = arith.mulf %268, %268 : vector<16x128xf32>
    %cst_192 = arith.constant dense<0.000000e+00> : vector<128xf32>
    %270 = vector.multi_reduction <add>, %269, %cst_192 [0] : vector<16x128xf32> to vector<128xf32>
    %271 = vector.shape_cast %270 : vector<128xf32> to vector<1x128xf32>
    %272 = arith.addf %266, %271 : vector<1x128xf32>
    %273 = vector.broadcast %265 : vector<1x128xf32> to vector<16x128xf32>
    %274 = arith.subf %248, %273 : vector<16x128xf32>
    %275 = arith.mulf %274, %274 : vector<16x128xf32>
    %cst_193 = arith.constant dense<0.000000e+00> : vector<128xf32>
    %276 = vector.multi_reduction <add>, %275, %cst_193 [0] : vector<16x128xf32> to vector<128xf32>
    %277 = vector.shape_cast %276 : vector<128xf32> to vector<1x128xf32>
    %278 = arith.addf %272, %277 : vector<1x128xf32>
    %c8_i32_194 = arith.constant 8 : i32
    %279 = tpu.dynamic_rotate %278 by %c8_i32_194 dim 1 : vector<1x128xf32>, i32 -> vector<1x128xf32>
    %280 = arith.addf %278, %279 : vector<1x128xf32>
    %c16_i32_195 = arith.constant 16 : i32
    %281 = tpu.dynamic_rotate %280 by %c16_i32_195 dim 1 : vector<1x128xf32>, i32 -> vector<1x128xf32>
    %282 = arith.addf %280, %281 : vector<1x128xf32>
    %c32_i32_196 = arith.constant 32 : i32
    %283 = tpu.dynamic_rotate %282 by %c32_i32_196 dim 1 : vector<1x128xf32>, i32 -> vector<1x128xf32>
    %284 = arith.addf %282, %283 : vector<1x128xf32>
    %c64_i32_197 = arith.constant 64 : i32
    %285 = tpu.dynamic_rotate %284 by %c64_i32_197 dim 1 : vector<1x128xf32>, i32 -> vector<1x128xf32>
    %286 = arith.addf %284, %285 : vector<1x128xf32>
    %cst_198 = arith.constant 0.001953125 : f32
    %287 = vector.broadcast %cst_198 : f32 to vector<1x128xf32>
    %288 = arith.mulf %286, %287 : vector<1x128xf32>
    %cst_199 = arith.constant 9.99999974E-6 : f32
    %289 = vector.broadcast %cst_199 : f32 to vector<1x128xf32>
    %290 = arith.addf %288, %289 : vector<1x128xf32>
    %291 = math.rsqrt %290 : vector<1x128xf32>
    %c0_200 = arith.constant 0 : index
    %c0_201 = arith.constant 0 : index
    %292 = vector.load %arg3[%c0_200, %c0_201] : memref<1x128xf32, #tpu.memory_space<vmem>>, vector<1x128xf32>
    %293 = arith.mulf %291, %292 : vector<1x128xf32>
    %c0_202 = arith.constant 0 : index
    %c0_203 = arith.constant 0 : index
    %294 = vector.load %arg4[%c0_202, %c0_203] : memref<1x128xf32, #tpu.memory_space<vmem>>, vector<1x128xf32>
    %295 = vector.broadcast %293 : vector<1x128xf32> to vector<16x128xf32>
    %296 = arith.mulf %268, %295 : vector<16x128xf32>
    %297 = vector.broadcast %294 : vector<1x128xf32> to vector<16x128xf32>
    %298 = arith.addf %296, %297 : vector<16x128xf32>
    %c0_204 = arith.constant 0 : index
    %c0_205 = arith.constant 0 : index
    %299 = vector.load %arg5[%c0_204, %c0_205] : memref<32x128xf32, #tpu.memory_space<vmem>>, vector<16x128xf32>
    tpu.vector_store %arg5[%c0_204, %c0_205], %298 {strides = array<i32>} : memref<32x128xf32, #tpu.memory_space<vmem>>, vector<16x128xf32>,
    %300 = vector.broadcast %293 : vector<1x128xf32> to vector<16x128xf32>
    %301 = arith.mulf %274, %300 : vector<16x128xf32>
    %302 = vector.broadcast %294 : vector<1x128xf32> to vector<16x128xf32>
    %303 = arith.addf %301, %302 : vector<16x128xf32>
    %c16_206 = arith.constant 16 : index
    %c0_207 = arith.constant 0 : index
    %304 = vector.load %arg5[%c16_206, %c0_207] : memref<32x128xf32, #tpu.memory_space<vmem>>, vector<16x128xf32>
    tpu.vector_store %arg5[%c16_206, %c0_207], %303 {strides = array<i32>} : memref<32x128xf32, #tpu.memory_space<vmem>>, vector<16x128xf32>,
    return
  }
}

</mosaic_0001>

<bundles_post_ra>
// kernel: tpu_custom_call.1
= control target key start
LH: loop header
LB: loop body
LE: loop exit
PB: predicated region body
PF: predicated region fallthrough
CT: control target
= control target key end

     0   :  { %10 = vsyncpa [#allocation4], 0  ;;  %s986_s0 = inlined_call_operand.hbm [shape: f32[4,32,128], index: 0, kind: input, shape index: {}]   ;;  %s987_s1 = inlined_call_operand.hbm [shape: f32[4,128], index: 1, kind: input, shape index: {}]   ;;  %s988_s2 = inlined_call_operand.hbm [shape: f32[17,128], index: 2, kind: input, shape index: {}]   ;;  %s989_s3 = inlined_call_operand.vmem [shape: f32[1,128], index: 3, kind: input, shape index: {}]   ;;  %s990_s4 = inlined_call_operand.vmem [shape: f32[1,128], index: 4, kind: input, shape index: {}]   ;;  %s991_s5 = inlined_call_operand.hbm [shape: f32[32,128], index: 5, kind: output, shape index: {}]  }
   0x1   :  { %11 = vsyncpa [#allocation7], 0  ;;  %s31_s20 = sshll.u32 %s987_s1, 4  ;;  %s32_s20 = int_to_ptr.hbm [resolvable:$true] %s31_s20 }
   0x2   :  { %12 = vsyncpa [#allocation5], 0  ;;  %s733_s21 = smov [#allocation6]   ;;  %s17_s25 = sshll.u32 %s986_s0, 4  ;;  %s18_s25 = int_to_ptr.hbm [resolvable:$true] %s17_s25 }
   0x3   :  { %s33_s22 = sshll.u32 %s733_s21, 4  ;;  %s734_s26 = smov [#allocation3]   ;;  %s34_s22 = int_to_ptr.vmem [resolvable:$true] %s33_s22 }
   0x4   :  { %36 = dma.hbm_to_vmem [thread:$0]  %s32_s20, 64, %s34_s22, [#allocation7]  }
   0x5   :  { %s19_s27 = sshll.u32 %s734_s26, 4  ;;  %s735_s28 = smov 128   ;;  %s20_s27 = int_to_ptr.vmem [resolvable:$true] %s19_s27 }
   0x6   :  { %s736_s29 = smov 8   ;;  %s41_s6 = sshll.u32 %s988_s2, 4  ;;  %s42_s6 = int_to_ptr.hbm [resolvable:$true] %s41_s6 }
   0x7   :  { %25 = dma.hbm_to_vmem [thread:$0]  %s18_s25, 2048, %s20_s27, [#allocation4], %s735_s28, %s735_s28, %s736_s29  }
   0x8   :  { %s737_s7 = smov [#allocation8]  }
   0x9   :  { %s43_s8 = sshll.u32 %s737_s7, 4  ;;  %s44_s8 = int_to_ptr.vmem [resolvable:$true] %s43_s8 }
   0xa   :  { %49 = dma.hbm_to_vmem [thread:$0]  %s42_s6, 384, %s44_s8, [#allocation7], %s735_s28, %s735_s28, %s736_s29  }
   0xb   :  { %727 = dma.done.wait [#allocation4], 2048  }
   0xc   :  { %728 = vsyncadd [#allocation4], 4294965248 }
   0xd   :  { %729 = dma.done.wait [#allocation7], 448  }
   0xe   :  { %730 = vsyncadd [#allocation7], 4294966848  ;;  %v738_v0 = vmov 0.0   ;;  %v263_v1 = vld [vmem:[#allocation3 + $0x10] sm:$0xff]  ;;  %v586_v2 = vld [vmem:[#allocation6] ss:$0 sm:$0xff] }
   0xf   :  { %293 = vst [vmem:[#allocation2 + $0x20] sm:$0xff] %v738_v0  ;;  %v269_v3 = vld [vmem:[#allocation3 + $0x30] sm:$0xff]  ;;  %v587_v4 = vld [vmem:[#allocation6 + $0x1] ss:$0 sm:$0xff]  ;;  %v267_v5 = vmul.f32 %v586_v2, %v263_v1  ;;  %v588_v7 = vld [vmem:[#allocation6 + $0x2] ss:$0 sm:$0xff] }
  0x10   :  { %99 = vst [vmem:[#allocation2] sm:$0xff] %v738_v0  ;;  %v277_v6 = vld [vmem:[#allocation3 + $0x50] sm:$0xff]  ;;  %v273_v8 = vmul.f32 %v587_v4, %v269_v3  ;;  %v589_v10 = vld [vmem:[#allocation6 + $0x3] ss:$0 sm:$0xff]  ;;  %v591_v15 = vld [vmem:[#allocation6] ss:$0 sm:$0xff] }
  0x11   :  { %100 = vst [vmem:[#allocation2 + $0x18] sm:$0xff] %v738_v0  ;;  %v285_v9 = vld [vmem:[#allocation3 + $0x70] sm:$0xff]  ;;  %v281_v11 = vmul.f32 %v588_v7, %v277_v6  ;;  %v66_v12 = vld [vmem:[#allocation3] sm:$0xff]  ;;  %v264_v27 = vld [vmem:[#allocation3 + $0x18] sm:$0xff]  ;;  %s739_s0 = smov 16   ;;  %s740_s2 = smov 112  }
  0x12   :  { %294 = vst [vmem:[#allocation2 + $0x38] sm:$0xff] %v738_v0  ;;  %v275_v13 = vadd.f32 %v273_v8, %v267_v5  ;;  %v289_v14 = vmul.f32 %v589_v10, %v285_v9  ;;  %v73_v16 = vld [vmem:[#allocation3 + $0x20] sm:$0xff]  ;;  %v70_v20 = vmul.f32 %v591_v15, %v66_v12  ;;  %v270_v28 = vld [vmem:[#allocation3 + $0x38] sm:$0xff]  ;;  %v268_v31 = vmul.f32 %v586_v2, %v264_v27  ;;  %v67_v35 = vld [vmem:[#allocation3 + $0x8] sm:$0xff]  ;;  %s741_s9 = smov 120   ;;  %s742_s10 = smov 32  }
  0x13   :  { %v592_v17 = vld [vmem:[#allocation6 + $0x1] ss:$0 sm:$0xff]  ;;  %v593_v21 = vld [vmem:[#allocation6 + $0x2] ss:$0 sm:$0xff]  ;;  %v594_v24 = vld [vmem:[#allocation6 + $0x3] ss:$0 sm:$0xff]  ;;  %v274_v32 = vmul.f32 %v587_v4, %v270_v28  ;;  %v71_v38 = vmul.f32 %v591_v15, %v67_v35 }
  0x14   :  { %v82_v18 = vld [vmem:[#allocation3 + $0x40] sm:$0xff]  ;;  %v283_v19 = vadd.f32 %v281_v11, %v275_v13  ;;  %v77_v23 = vmul.f32 %v592_v17, %v73_v16  ;;  %v278_v33 = vld [vmem:[#allocation3 + $0x58] sm:$0xff]  ;;  %v74_v39 = vld [vmem:[#allocation3 + $0x28] sm:$0xff]  ;;  %s743_s11 = smov 64   ;;  %s744_s16 = smov [#allocation9]  }
  0x15   :  { %v91_v22 = vld [vmem:[#allocation3 + $0x60] sm:$0xff]  ;;  %v86_v26 = vmul.f32 %v593_v21, %v82_v18  ;;  %v286_v34 = vld [vmem:[#allocation3 + $0x78] sm:$0xff]  ;;  %v282_v36 = vmul.f32 %v588_v7, %v278_v33  ;;  %v83_v40 = vld [vmem:[#allocation3 + $0x48] sm:$0xff]  ;;  %v276_v43 = vadd.f32 %v274_v32, %v268_v31  ;;  %v78_v44 = vmul.f32 %v592_v17, %v74_v39  ;;  %s558_s17 = sshll.u32 %s744_s16, 4  ;;  %s560_s19 = sshll.u32 %s991_s5, 4  ;;  %s559_s17 = int_to_ptr.vmem [resolvable:$true] %s558_s17  ;;  %s561_s19 = int_to_ptr.hbm [resolvable:$true] %s560_s19 }
  0x16   :  { %v790_v25 = vadd.f32 %v289_v14, %v283_v19  ;;  %v79_v29 = vadd.f32 %v77_v23, %v70_v20  ;;  %v95_v30 = vmul.f32 %v594_v24, %v91_v22  ;;  %v290_v37 = vmul.f32 %v589_v10, %v286_v34  ;;  %v92_v41 = vld [vmem:[#allocation3 + $0x68] sm:$0xff]  ;;  %v590_v5 = vld [vmem:[#allocation8 + $0x1] ss:$0 sm:$0xff]  ;;  %v603_v7 = vld [vmem:[#allocation8] ss:$0 sm:$0xff] }
  0x17   :  { %v87_v45 = vmul.f32 %v593_v21, %v83_v40  ;;  %v284_v47 = vadd.f32 %v282_v36, %v276_v43  ;;  %v80_v48 = vadd.f32 %v78_v44, %v71_v38  ;;  %v96_v49 = vmul.f32 %v594_v24, %v92_v41  ;;  %v595_v10 = vld [vmem:[#allocation8 + $0x1] ss:$0 sm:$0xff]  ;;  %v604_v14 = vld [vmem:[#allocation8] ss:$0 sm:$0xff]  ;;  %v600_v17 = vld [vmem:[#allocation8 + $0x2] ss:$0 sm:$0xff] }
  0x18   :  { %295 = vst [vmem:[#allocation2 + $0x28] sm:$0xff] %v790_v25  ;;  %v88_v42 = vadd.f32 %v86_v26, %v79_v29  ;;  %v605_v18 = vld [vmem:[#allocation8 + $0x3] ss:$0 sm:$0xff]  ;;  %v597_v21 = vld [vmem:[#allocation8 + $0x4] ss:$0 sm:$0xff] }
  0x19   :  { %v796_v50 = vadd.f32 %v290_v37, %v284_v47  ;;  %v89_v51 = vadd.f32 %v87_v45, %v80_v48  ;;  %v606_v36 = vld [vmem:[#allocation8 + $0x2] ss:$0 sm:$0xff]  ;;  %v607_v37 = vld [vmem:[#allocation8 + $0x3] ss:$0 sm:$0xff]  ;;  %v596_v41 = vld [vmem:[#allocation8 + $0x4] ss:$0 sm:$0xff] }
  0x1a   :  { %v793_v46 = vadd.f32 %v95_v30, %v88_v42 }
  0x1b   :  { %296 = vst [vmem:[#allocation2 + $0x30] sm:$0xff] %v796_v50  ;;  %v801_v53 = vadd.f32 %v96_v49, %v89_v51 }
  0x1c   :  { %101 = vst [vmem:[#allocation2 + $0x8] sm:$0xff] %v793_v46 }
  0x1d   :  { %102 = vst [vmem:[#allocation2 + $0x10] sm:$0xff] %v801_v53 }
  0x1f   :  { %v798_v52 = vld [vmem:[#allocation2 + $0x26] sm:$0xff] }
  0x20   :  { %299 = vrot.lane.b32.xlu1 %v798_v52, %s739_s0  ;;  %v828_v58 = vld [vmem:[#allocation2 + $0x27] sm:$0xff]  ;;  %v311_v9 = vmul.f32 %v590_v5, %v798_v52 }
  0x22   :  { %v812_v55 = vld [vmem:[#allocation2 + $0x2e] sm:$0xff] }
  0x23   :  { %v806_v54 = vld [vmem:[#allocation2 + $0x6] sm:$0xff]  ;;  %v836_v60 = vld [vmem:[#allocation2 + $0x2f] sm:$0xff]  ;;  %v312_v23 = vmul.f32 %v590_v5, %v812_v55 }
  0x24   :  { %105 = vrot.lane.b32.xlu0 %v806_v54, %s739_s0  ;;  %121 = vrot.lane.b32.xlu2 %v806_v54, %s740_s2  ;;  %v816_v56 = vld [vmem:[#allocation2 + $0xe] sm:$0xff]  ;;  %v117_v16 = vmul.f32 %v595_v10, %v806_v54  ;;  %v340_v49 = vmul.f32 %v596_v41, %v836_v60 }
  0x25   :  { %v824_v57 = vld [vmem:[#allocation2 + $0x7] sm:$0xff]  ;;  %v834_v59 = vld [vmem:[#allocation2 + $0xf] sm:$0xff]  ;;  %v118_v33 = vmul.f32 %v595_v10, %v816_v56 }
  0x26   :  { %v880_v61 = vld [vmem:[#allocation2 + $0x9] sm:$0xff]  ;;  %v890_v63 = vld [vmem:[#allocation2 + $0x11] sm:$0xff]  ;;  %v145_v30 = vmul.f32 %v597_v21, %v824_v57 }
  0x27   :  { %v884_v62 = vld [vmem:[#allocation2 + $0x29] sm:$0xff]  ;;  %v892_v0 = vld [vmem:[#allocation2 + $0x31] sm:$0xff] }
  0x28   :  { %301 = vrot.lane.b32.xlu1 %v812_v55, %s739_s0  ;;  %v902_v2 = vld [vmem:[#allocation2 + $0xa] sm:$0xff]  ;;  %v908_v4 = vld [vmem:[#allocation2 + $0x12] sm:$0xff] }
  0x29   :  { %v912_v6 = vld [vmem:[#allocation2 + $0x32] sm:$0xff]  ;;  %v919_v11 = vld [vmem:[#allocation2 + $0x2a] sm:$0xff] }
  0x2c   :  { %107 = vrot.lane.b32.xlu0 %v816_v56, %s739_s0  ;;  %123 = vrot.lane.b32.xlu2 %v816_v56, %s740_s2 }
  0x30   :  { %317 = vrot.lane.b32.xlu1 %v812_v55, %s740_s2 }
  0x34   :  { %315 = vrot.lane.b32.xlu0 %v798_v52, %s740_s2  ;;  %133 = vrot.lane.b32.xlu2 %v824_v57, %s736_s29 }
  0x38   :  { %327 = vrot.lane.b32.xlu1 %v828_v58, %s736_s29 }
  0x3c   :  { %135 = vrot.lane.b32.xlu0 %v834_v59, %s736_s29  ;;  %329 = vrot.lane.b32.xlu2 %v836_v60, %s736_s29 }
  0x40   :  { %151 = vrot.lane.b32.xlu1 %v834_v59, %s741_s9 }
  0x44   :  { %149 = vrot.lane.b32.xlu0 %v824_v57, %s741_s9  ;;  %343 = vrot.lane.b32.xlu2 %v828_v58, %s741_s9  ;;  %v608_v57 = vld [vmem:[#allocation8 + $0x5] ss:$0 sm:$0xff] }
  0x48   :  { %161 = vrot.lane.b32.xlu1 %v793_v46, %s739_s0 }
  0x4c   :  { %345 = vrot.lane.b32.xlu0 %v836_v60, %s741_s9  ;;  %163 = vrot.lane.b32.xlu2 %v801_v53, %s739_s0  ;;  %v146_v60 = vmul.f32 %v597_v21, %v834_v59 }
  0x50   :  { %357 = vrot.lane.b32.xlu1 %v796_v50, %s739_s0 }
  0x54   :  { %355 = vrot.lane.b32.xlu0 %v790_v25, %s739_s0  ;;  %171 = vrot.lane.b32.xlu2 %v793_v46, %s736_s29 }
  0x58   :  { %365 = vrot.lane.b32.xlu1 %v790_v25, %s736_s29 }
  0x5c   :  { %173 = vrot.lane.b32.xlu0 %v801_v53, %s736_s29  ;;  %367 = vrot.lane.b32.xlu2 %v796_v50, %s736_s29 }
  0x60   :  { %189 = vrot.lane.b32.xlu1 %v801_v53, %s741_s9 }
  0x64   :  { %187 = vrot.lane.b32.xlu0 %v793_v46, %s741_s9  ;;  %381 = vrot.lane.b32.xlu2 %v790_v25, %s741_s9 }
  0x68   :  { %197 = vrot.lane.b32.xlu1 %v793_v46, %s740_s2 }
  0x6c   :  { %383 = vrot.lane.b32.xlu0 %v796_v50, %s741_s9  ;;  %199 = vrot.lane.b32.xlu2 %v801_v53, %s740_s2 }
  0x70   :  { %393 = vrot.lane.b32.xlu1 %v796_v50, %s740_s2 }
  0x74   :  { %391 = vrot.lane.b32.xlu0 %v790_v25, %s740_s2  ;;  %209 = vrot.lane.b32.xlu2 %v880_v61, %s736_s29 }
  0x78   :  { %403 = vrot.lane.b32.xlu1 %v884_v62, %s736_s29 }
  0x7c   :  { %211 = vrot.lane.b32.xlu0 %v890_v63, %s736_s29  ;;  %405 = vrot.lane.b32.xlu2 %v892_v0, %s736_s29 }
  0x7e   :  { %v122_v1 = vpop.permute.xlu2 %121 }
  0x7f   :  { %v127_v24 = vmul.f32 %v600_v17, %v122_v1 }
  0x80   :  { %227 = vrot.lane.b32.xlu1 %v890_v63, %s741_s9 }
  0x84   :  { %225 = vrot.lane.b32.xlu0 %v880_v61, %s741_s9  ;;  %419 = vrot.lane.b32.xlu2 %v884_v62, %s741_s9 }
  0x86   :  { %v124_v3 = vpop.permute.xlu2 %123 }
  0x87   :  { %v128_v42 = vmul.f32 %v600_v17, %v124_v3 }
  0x88   :  { %237 = vrot.lane.b32.xlu1 %v902_v2, %s739_s0 }
  0x8c   :  { %421 = vrot.lane.b32.xlu0 %v892_v0, %s741_s9  ;;  %239 = vrot.lane.b32.xlu2 %v908_v4, %s739_s0 }
  0x8e   :  { %v134_v8 = vpop.permute.xlu2 %133 }
  0x8f   :  { %v139_v27 = vmul.f32 %v605_v18, %v134_v8  ;;  %v339_v8 = vmul.f32 %v596_v41, %v828_v58  ;;  %v616_v41 = vld [vmem:[#allocation8 + $0x8] ss:$0 sm:$0xff] }
  0x90   :  { %433 = vrot.lane.b32.xlu1 %v912_v6, %s739_s0 }
  0x92   :  { %v300_v12 = vpop.permute.xlu1 %299 }
  0x93   :  { %v305_v13 = vmul.f32 %v603_v7, %v300_v12 }
  0x94   :  { %431 = vrot.lane.b32.xlu0 %v919_v11, %s739_s0  ;;  %253 = vrot.lane.b32.xlu2 %v902_v2, %s740_s2 }
  0x95   :  { %v313_v15 = vadd.f32 %v311_v9, %v305_v13 }
  0x96   :  { %v106_v19 = vpop.permute.xlu0 %105  ;;  %v330_v20 = vpop.permute.xlu2 %329 }
  0x97   :  { %v111_v22 = vmul.f32 %v604_v14, %v106_v19  ;;  %v334_v47 = vmul.f32 %v607_v37, %v330_v20 }
  0x98   :  { %447 = vrot.lane.b32.xlu1 %v919_v11, %s740_s2 }
  0x99   :  { %v119_v26 = vadd.f32 %v117_v16, %v111_v22 }
  0x9a   :  { %v302_v28 = vpop.permute.xlu1 %301 }
  0x9b   :  { %v306_v29 = vmul.f32 %v603_v7, %v302_v28  ;;  %v129_v31 = vadd.f32 %v127_v24, %v119_v26 }
  0x9c   :  { %255 = vrot.lane.b32.xlu0 %v908_v4, %s740_s2  ;;  %449 = vrot.lane.b32.xlu2 %v912_v6, %s740_s2 }
  0x9d   :  { %v314_v32 = vadd.f32 %v312_v23, %v306_v29  ;;  %v141_v34 = vadd.f32 %v139_v27, %v129_v31 }
  0x9e   :  { %v108_v35 = vpop.permute.xlu0 %107  ;;  %v344_v38 = vpop.permute.xlu2 %343 }
  0x9f   :  { %v112_v39 = vmul.f32 %v604_v14, %v108_v35  ;;  %v147_v40 = vadd.f32 %v145_v30, %v141_v34  ;;  %v349_v10 = vmul.f32 %v608_v57, %v344_v38  ;;  %v609_v14 = vld [vmem:[#allocation8 + $0x5] ss:$0 sm:$0xff]  ;;  %v611_v35 = vld [vmem:[#allocation8 + $0x7] ss:$0 sm:$0xff] }
  0xa1   :  { %v120_v43 = vadd.f32 %v118_v33, %v112_v39  ;;  %v612_v39 = vld [vmem:[#allocation8 + $0x6] ss:$0 sm:$0xff] }
  0xa2   :  { %v318_v44 = vpop.permute.xlu1 %317 }
  0xa3   :  { %v322_v45 = vmul.f32 %v606_v36, %v318_v44  ;;  %v130_v48 = vadd.f32 %v128_v42, %v120_v43  ;;  %v617_v44 = vld [vmem:[#allocation8 + $0x9] ss:$0 sm:$0xff] }
  0xa5   :  { %v324_v51 = vadd.f32 %v322_v45, %v314_v32 }
  0xa6   :  { %v316_v52 = vpop.permute.xlu0 %315  ;;  %v936_v55 = vpop.permute.xlu2 %163 }
  0xa7   :  { %v336_v54 = vadd.f32 %v334_v47, %v324_v51  ;;  %v321_v56 = vmul.f32 %v606_v36, %v316_v52 }
  0xa9   :  { %v342_v1 = vadd.f32 %v340_v49, %v336_v54  ;;  %v323_v5 = vadd.f32 %v321_v56, %v313_v15  ;;  %v183_v49 = vmul.f32 %v616_v41, %v793_v46  ;;  %v947_v54 = vld [vmem:[#allocation8 + $0xb] ss:$0 sm:$0xff]  ;;  %v599_v56 = vld [vmem:[#allocation8 + $0xc] ss:$0 sm:$0xff] }
  0xaa   :  { %v328_v7 = vpop.permute.xlu1 %327 }
  0xab   :  { %v333_v3 = vmul.f32 %v607_v37, %v328_v7 }
  0xad   :  { %v335_v9 = vadd.f32 %v333_v3, %v323_v5  ;;  %v614_v3 = vld [vmem:[#allocation8 + $0x8] ss:$0 sm:$0xff] }
  0xae   :  { %v136_v12 = vpop.permute.xlu0 %135  ;;  %v172_v16 = vpop.permute.xlu2 %171 }
  0xaf   :  { %v341_v13 = vadd.f32 %v339_v8, %v335_v9  ;;  %v140_v17 = vmul.f32 %v605_v18, %v136_v12  ;;  %v610_v18 = vld [vmem:[#allocation8 + $0x6] ss:$0 sm:$0xff]  ;;  %v177_v38 = vmul.f32 %v611_v35, %v172_v16 }
  0xb1   :  { %v351_v19 = vadd.f32 %v349_v10, %v341_v13  ;;  %v142_v20 = vadd.f32 %v140_v17, %v130_v48  ;;  %v613_v48 = vld [vmem:[#allocation8 + $0x7] ss:$0 sm:$0xff]  ;;  %v618_v10 = vld [vmem:[#allocation8 + $0xa] ss:$0 sm:$0xff] }
  0xb2   :  { %v152_v22 = vpop.permute.xlu1 %151 }
  0xb3   :  { %v156_v23 = vmul.f32 %v609_v14, %v152_v22  ;;  %v148_v24 = vadd.f32 %v146_v60, %v142_v20  ;;  %v221_v60 = vmul.f32 %v599_v56, %v880_v61  ;;  %v378_v20 = vmul.f32 %v614_v3, %v796_v50 }
  0xb5   :  { %v940_v26 = vadd.f32 %v156_v23, %v148_v24  ;;  %v615_v23 = vld [vmem:[#allocation8 + $0x9] ss:$0 sm:$0xff] }
  0xb6   :  { %v150_v15 = vpop.permute.xlu0 %149  ;;  %v368_v27 = vpop.permute.xlu2 %367 }
  0xb7   :  { %v155_v58 = vmul.f32 %v609_v14, %v150_v15  ;;  %v372_v8 = vmul.f32 %v613_v48, %v368_v27 }
  0xb9   :  { %v157_v28 = vadd.f32 %v155_v58, %v147_v40  ;;  %v620_v58 = vld [vmem:[#allocation8 + $0xa] ss:$0 sm:$0xff] }
  0xba   :  { %v162_v29 = vpop.permute.xlu1 %161 }
  0xbb   :  { %v167_v21 = vmul.f32 %v610_v18, %v162_v29  ;;  %v168_v29 = vmul.f32 %v610_v18, %v936_v55 }
  0xbd   :  { %v169_v37 = vadd.f32 %v167_v21, %v157_v28  ;;  %v621_v28 = vld [vmem:[#allocation8 + $0xb] ss:$0 sm:$0xff]  ;;  %v377_v21 = vmul.f32 %v614_v3, %v790_v25 }
  0xbe   :  { %v346_v30 = vpop.permute.xlu0 %345  ;;  %v942_v31 = vpop.permute.xlu2 %381 }
  0xbf   :  { %v350_v43 = vmul.f32 %v608_v57, %v346_v30  ;;  %v179_v45 = vadd.f32 %v177_v38, %v169_v37 }
  0xc1   :  { %v352_v51 = vadd.f32 %v350_v43, %v342_v1  ;;  %v185_v9 = vadd.f32 %v183_v49, %v179_v45 }
  0xc2   :  { %v358_v32 = vpop.permute.xlu1 %357 }
  0xc3   :  { %v362_v47 = vmul.f32 %v612_v39, %v358_v32  ;;  %v598_v32 = vld [vmem:[#allocation8 + $0xc] ss:$0 sm:$0xff] }
  0xc5   :  { %v364_v7 = vadd.f32 %v362_v47, %v352_v51  ;;  %v387_v47 = vmul.f32 %v615_v23, %v942_v31 }
  0xc6   :  { %v356_v33 = vpop.permute.xlu0 %355  ;;  %v944_v34 = vpop.permute.xlu2 %199 }
  0xc7   :  { %v361_v57 = vmul.f32 %v612_v39, %v356_v33  ;;  %v374_v46 = vadd.f32 %v372_v8, %v364_v7  ;;  %v204_v31 = vmul.f32 %v618_v10, %v944_v34 }
  0xc9   :  { %v363_v24 = vadd.f32 %v361_v57, %v351_v19  ;;  %v380_v61 = vadd.f32 %v378_v20, %v374_v46  ;;  %v170_v19 = vadd.f32 %v168_v29, %v940_v26  ;;  %v415_v26 = vmul.f32 %v598_v32, %v884_v62  ;;  %v622_v29 = vld [vmem:[#allocation8 + $0xd] ss:$0 sm:$0xff] }
  0xca   :  { %v366_v59 = vpop.permute.xlu1 %365 }
  0xcb   :  { %v371_v1 = vmul.f32 %v613_v48, %v366_v59  ;;  %v184_v48 = vmul.f32 %v616_v41, %v801_v53  ;;  %v623_v53 = vld [vmem:[#allocation8 + $0xd] ss:$0 sm:$0xff]  ;;  %v222_v41 = vmul.f32 %v599_v56, %v890_v63 }
  0xcd   :  { %v373_v33 = vadd.f32 %v371_v1, %v363_v24 }
  0xce   :  { %v174_v36 = vpop.permute.xlu0 %173  ;;  %v210_v40 = vpop.permute.xlu2 %209 }
  0xcf   :  { %v215_v16 = vmul.f32 %v947_v54, %v210_v40  ;;  %v178_v59 = vmul.f32 %v611_v35, %v174_v36  ;;  %v416_v40 = vmul.f32 %v598_v32, %v892_v0  ;;  %v379_v45 = vadd.f32 %v377_v21, %v373_v33  ;;  %v626_v21 = vld [vmem:[#allocation8 + $0xe] ss:$0 sm:$0xff] }
  0xd1   :  { %v180_v18 = vadd.f32 %v178_v59, %v170_v19  ;;  %v389_v36 = vadd.f32 %v387_v47, %v379_v45  ;;  %v627_v19 = vld [vmem:[#allocation8 + $0x10] ss:$0 sm:$0xff] }
  0xd2   :  { %v190_v42 = vpop.permute.xlu1 %189 }
  0xd3   :  { %v186_v7 = vadd.f32 %v184_v48, %v180_v18  ;;  %v625_v18 = vld [vmem:[#allocation8 + $0x10] ss:$0 sm:$0xff] }
  0xd6   :  { %v188_v52 = vpop.permute.xlu0 %187  ;;  %v406_v22 = vpop.permute.xlu2 %405 }
  0xd7   :  { %v193_v5 = vmul.f32 %v617_v44, %v188_v52  ;;  %v410_v43 = vmul.f32 %v621_v28, %v406_v22  ;;  %v194_v52 = vmul.f32 %v617_v44, %v190_v42  ;;  %v624_v44 = vld [vmem:[#allocation8 + $0xe] ss:$0 sm:$0xff] }
  0xd9   :  { %v195_v13 = vadd.f32 %v193_v5, %v185_v9  ;;  %v196_v9 = vadd.f32 %v194_v52, %v186_v7 }
  0xda   :  { %v198_v12 = vpop.permute.xlu1 %197 }
  0xdb   :  { %v203_v14 = vmul.f32 %v618_v10, %v198_v12 }
  0xdd   :  { %v205_v17 = vadd.f32 %v203_v14, %v195_v13  ;;  %v206_v14 = vadd.f32 %v204_v31, %v196_v9 }
  0xde   :  { %v384_v15 = vpop.permute.xlu0 %383  ;;  %v420_v51 = vpop.permute.xlu2 %419 }
  0xdf   :  { %v217_v27 = vadd.f32 %v215_v16, %v205_v17  ;;  %v388_v30 = vmul.f32 %v615_v23, %v384_v15 }
  0xe1   :  { %v223_v37 = vadd.f32 %v221_v60, %v217_v27  ;;  %v390_v39 = vadd.f32 %v388_v30, %v380_v61  ;;  %v601_v60 = vld [vmem:[#allocation8 + $0xf] ss:$0 sm:$0xff] }
  0xe2   :  { %v394_v38 = vpop.permute.xlu1 %393  ;;  %v250_v22 = vmul.f32 %v601_v60, %v908_v4  ;;  %v249_v63 = vmul.f32 %v601_v60, %v902_v2  ;;  %v602_v30 = vld [vmem:[#allocation8 + $0xf] ss:$0 sm:$0xff] }
  0xe3   :  { %v398_v50 = vmul.f32 %v620_v58, %v394_v38  ;;  %v444_v4 = vmul.f32 %v602_v30, %v912_v6  ;;  %v443_v45 = vmul.f32 %v602_v30, %v919_v11 }
  0xe5   :  { %v400_v55 = vadd.f32 %v398_v50, %v390_v39  ;;  %v425_v50 = vmul.f32 %v622_v29, %v420_v51 }
  0xe6   :  { %v392_v49 = vpop.permute.xlu0 %391  ;;  %v240_v16 = vpop.permute.xlu2 %239 }
  0xe7   :  { %v412_v25 = vadd.f32 %v410_v43, %v400_v55  ;;  %v397_v35 = vmul.f32 %v620_v58, %v392_v49  ;;  %v244_v20 = vmul.f32 %v624_v44, %v240_v16 }
  0xe9   :  { %v418_v5 = vadd.f32 %v416_v40, %v412_v25  ;;  %v399_v3 = vadd.f32 %v397_v35, %v389_v36 }
  0xea   :  { %v404_v8 = vpop.permute.xlu1 %403 }
  0xeb   :  { %v409_v0 = vmul.f32 %v621_v28, %v404_v8 }
  0xed   :  { %v411_v12 = vadd.f32 %v409_v0, %v399_v3 }
  0xee   :  { %v212_v57 = vpop.permute.xlu0 %211  ;;  %v254_v28 = vpop.permute.xlu2 %253 }
  0xef   :  { %v417_v13 = vadd.f32 %v415_v26, %v411_v12  ;;  %v216_v42 = vmul.f32 %v947_v54, %v212_v57  ;;  %v259_v36 = vmul.f32 %v625_v18, %v254_v28 }
  0xf1   :  { %v218_v46 = vadd.f32 %v216_v42, %v206_v14  ;;  %v427_v47 = vadd.f32 %v425_v50, %v417_v13 }
  0xf2   :  { %v228_v1 = vpop.permute.xlu1 %227 }
  0xf3   :  { %v232_v62 = vmul.f32 %v623_v53, %v228_v1  ;;  %v224_v17 = vadd.f32 %v222_v41, %v218_v46 }
  0xf5   :  { %v234_v34 = vadd.f32 %v232_v62, %v224_v17 }
  0xf6   :  { %v226_v10 = vpop.permute.xlu0 %225  ;;  %v450_v2 = vpop.permute.xlu2 %449 }
  0xf7   :  { %v231_v23 = vmul.f32 %v623_v53, %v226_v10  ;;  %v246_v24 = vadd.f32 %v244_v20, %v234_v34  ;;  %v454_v49 = vmul.f32 %v627_v19, %v450_v2 }
  0xf9   :  { %v252_v27 = vadd.f32 %v250_v22, %v246_v24  ;;  %v233_v56 = vadd.f32 %v231_v23, %v223_v37 }
  0xfa   :  { %v238_v15 = vpop.permute.xlu1 %237 }
  0xfb   :  { %v243_v54 = vmul.f32 %v624_v44, %v238_v15 }
  0xfd   :  { %v245_v58 = vadd.f32 %v243_v54, %v233_v56 }
  0xfe   :  { %v422_v32 = vpop.permute.xlu0 %421 }
  0xff   :  { %v251_v33 = vadd.f32 %v249_v63, %v245_v58  ;;  %v426_v61 = vmul.f32 %v622_v29, %v422_v32 }
 0x101   :  { %v428_v38 = vadd.f32 %v426_v61, %v418_v5  ;;  %v261_v26 = vadd.f32 %v259_v36, %v251_v33 }
 0x102   :  { %v434_v59 = vpop.permute.xlu1 %433 }
 0x103   :  { %v438_v39 = vmul.f32 %v626_v21, %v434_v59 }
 0x105   :  { %v440_v43 = vadd.f32 %v438_v39, %v428_v38 }
 0x106   :  { %v432_v40 = vpop.permute.xlu0 %431 }
 0x107   :  { %v446_v37 = vadd.f32 %v444_v4, %v440_v43  ;;  %v437_v55 = vmul.f32 %v626_v21, %v432_v40 }
 0x109   :  { %v439_v48 = vadd.f32 %v437_v55, %v427_v47  ;;  %v456_v6 = vadd.f32 %v454_v49, %v446_v37 }
 0x10a   :  { %v448_v25 = vpop.permute.xlu1 %447 }
 0x10b   :  { %v453_v52 = vmul.f32 %v627_v19, %v448_v25  ;;  %v445_v35 = vadd.f32 %v443_v45, %v439_v48 }
 0x10d   :  { %v455_v5 = vadd.f32 %v453_v52, %v445_v35 }
 0x10e   :  { %v256_v7 = vpop.permute.xlu0 %255 }
 0x10f   :  { %v465_v51 = vadd.f32 %v456_v6, %v455_v5  ;;  %v260_v8 = vmul.f32 %v625_v18, %v256_v7 }
 0x111   :  { %v466_v3 = vrot.slane %v465_v51, 4  ;;  %v262_v0 = vadd.f32 %v260_v8, %v252_v27 }
 0x113   :  { %v467_v9 = vadd.f32 %v466_v3, %v465_v51  ;;  %v457_v31 = vadd.f32 %v262_v0, %v261_v26 }
 0x115   :  { %v458_v11 = vrot.slane %v457_v31, 4  ;;  %v468_v12 = vrot.slane %v467_v9, 2 }
 0x117   :  { %v459_v57 = vadd.f32 %v458_v11, %v457_v31  ;;  %v469_v13 = vadd.f32 %v468_v12, %v467_v9  ;;  %v628_v11 = vld [vmem:[%s990_s4] ss:$0 sm:$0xff] }
 0x119   :  { %v460_v53 = vrot.slane %v459_v57, 2  ;;  %v470_v41 = vrot.slane %v469_v13, 1 }
 0x11b   :  { %v461_v14 = vadd.f32 %v460_v53, %v459_v57  ;;  %v471_v44 = vadd.f32 %v470_v41, %v469_v13 }
 0x11d   :  { %v462_v42 = vrot.slane %v461_v14, 1 }
 0x11f   :  { %v463_v16 = vadd.f32 %v462_v42, %v461_v14 }
 0x121   :  { %v472_v60 = vadd.f32 %v471_v44, %v463_v16 }
 0x123   :  { %473 = vrot.lane.b32.xlu0 %v472_v60, %s736_s29 }
 0x195   :  { %v474_v46 = vpop.permute.xlu0 %473 }
 0x196   :  { %v475_v1 = vadd.f32 %v474_v46, %v472_v60 }
 0x198   :  { %476 = vrot.lane.b32.xlu1 %v475_v1, %s739_s0 }
 0x20a   :  { %v477_v62 = vpop.permute.xlu1 %476 }
 0x20b   :  { %v478_v17 = vadd.f32 %v477_v62, %v475_v1 }
 0x20d   :  { %479 = vrot.lane.b32.xlu2 %v478_v17, %s742_s10 }
 0x267   :  { %v480_v20 = vpop.permute.xlu2 %479 }
 0x268   :  { %v481_v22 = vadd.f32 %v480_v20, %v478_v17 }
 0x26a   :  { %482 = vrot.lane.b32.xlu0 %v481_v22, %s743_s11 }
 0x2dc   :  { %v483_v34 = vpop.permute.xlu0 %482 }
 0x2dd   :  { %v484_v10 = vadd.f32 %v483_v34, %v481_v22 }
 0x2df   :  { %v485_v23 = vmul.f32 0.001953125, %v484_v10 }
 0x2e1   :  { %v486_v24 = vperm.slane %v485_v23, 0 }
 0x2e3   :  { %v487_v15 = vsub.f32 %v261_v26, %v486_v24  ;;  %v488_v27 = vsub.f32 %v262_v0, %v486_v24  ;;  %v499_v63 = vsub.f32 %v455_v5, %v486_v24  ;;  %v500_v56 = vsub.f32 %v456_v6, %v486_v24  ;;  %v535_v26 = vld [vmem:[%s989_s3] sm:$0x1] }
 0x2e5   :  { %v489_v54 = vmul.f32 %v487_v15, %v487_v15  ;;  %v490_v58 = vmul.f32 %v488_v27, %v488_v27  ;;  %v501_v28 = vmul.f32 %v499_v63, %v499_v63  ;;  %v502_v29 = vmul.f32 %v500_v56, %v500_v56 }
 0x2e7   :  { %v491_v30 = vadd.f32 %v490_v58, %v489_v54  ;;  %v503_v32 = vadd.f32 %v502_v29, %v501_v28 }
 0x2e9   :  { %v492_v33 = vrot.slane %v491_v30, 4  ;;  %v504_v21 = vrot.slane %v503_v32, 4 }
 0x2eb   :  { %v493_v61 = vadd.f32 %v492_v33, %v491_v30  ;;  %v505_v59 = vadd.f32 %v504_v21, %v503_v32 }
 0x2ed   :  { %v494_v4 = vrot.slane %v493_v61, 2  ;;  %v506_v38 = vrot.slane %v505_v59, 2 }
 0x2ef   :  { %v495_v39 = vadd.f32 %v494_v4, %v493_v61  ;;  %v507_v50 = vadd.f32 %v506_v38, %v505_v59 }
 0x2f1   :  { %v496_v43 = vrot.slane %v495_v39, 1  ;;  %v508_v19 = vrot.slane %v507_v50, 1 }
 0x2f3   :  { %v497_v40 = vadd.f32 %v496_v43, %v495_v39  ;;  %v509_v2 = vadd.f32 %v508_v19, %v507_v50 }
 0x2f5   :  { %v510_v37 = vadd.f32 %v509_v2, %v497_v40 }
 0x2f7   :  { %511 = vrot.lane.b32.xlu1 %v510_v37, %s736_s29 }
 0x369   :  { %v512_v45 = vpop.permute.xlu1 %511 }
 0x36a   :  { %v513_v47 = vadd.f32 %v512_v45, %v510_v37 }
 0x36c   :  { %514 = vrot.lane.b32.xlu2 %v513_v47, %s739_s0 }
 0x3c6   :  { %v515_v55 = vpop.permute.xlu2 %514 }
 0x3c7   :  { %v516_v18 = vadd.f32 %v515_v55, %v513_v47 }
 0x3c9   :  { %517 = vrot.lane.b32.xlu0 %v516_v18, %s742_s10 }
 0x43b   :  { %v518_v48 = vpop.permute.xlu0 %517 }
 0x43c   :  { %v519_v49 = vadd.f32 %v518_v48, %v516_v18 }
 0x43e   :  { %520 = vrot.lane.b32.xlu1 %v519_v49, %s743_s11 }
 0x4b0   :  { %v521_v25 = vpop.permute.xlu1 %520 }
 0x4b1   :  { %v522_v52 = vadd.f32 %v521_v25, %v519_v49 }
 0x4b3   :  { %v523_v35 = vmul.f32 0.001953125, %v522_v52 }
 0x4b5   :  { %v524_v36 = vadd.f32 1e-05, %v523_v35 }
 0x4b7   :  { %629 = vrsqrt.f32 %v524_v36  ;;  %vm531_vm1 = vweird.f32 %v524_v36 }
 0x4bd   :  { %v630_v6 = vpop.eup %629 }
 0x4be   :  { %v526_v5 = vmul.f32 %v630_v6, %v524_v36  ;;  %vm532_vm0 = vweird.f32 %v630_v6 }
 0x4bf   :  { %vm533_vm2 = vmor %vm531_vm1, %vm532_vm0 }
 0x4c0   :  { %v527_v7 = vmul.f32 %v630_v6, %v526_v5 }
 0x4c2   :  { %v528_v51 = vmul.f32 0.5, %v527_v7 }
 0x4c4   :  { %v529_v8 = vsub.f32 1.5, %v528_v51 }
 0x4c6   :  { %v530_v3 = vmul.f32 %v630_v6, %v529_v8 }
 0x4c8   :  { %v534_v0 = vsel %vm533_vm2, %v630_v6, %v530_v3 }
 0x4c9   :  { %v536_v9 = vmul.f32 %v535_v26, %v534_v0 }
 0x4cb   :  { %v538_v31 = vperm.slane %v536_v9, 0 }
 0x4cd   :  { %v539_v12 = vmul.f32 %v538_v31, %v487_v15  ;;  %v540_v57 = vmul.f32 %v538_v31, %v488_v27  ;;  %v548_v13 = vmul.f32 %v538_v31, %v499_v63  ;;  %v549_v53 = vmul.f32 %v538_v31, %v500_v56 }
 0x4cf   :  { %v544_v41 = vadd.f32 %v628_v11, %v539_v12  ;;  %v545_v14 = vadd.f32 %v628_v11, %v540_v57  ;;  %v550_v42 = vadd.f32 %v628_v11, %v548_v13  ;;  %v551_v44 = vadd.f32 %v628_v11, %v549_v53 }
 0x4d1   :  { %546 = vst [vmem:[#allocation9] sm:$0xff] %v544_v41 }
 0x4d2   :  { %547 = vst [vmem:[#allocation9 + $0x8] sm:$0xff] %v545_v14 }
 0x4d3   :  { %552 = vst [vmem:[#allocation9 + $0x10] sm:$0xff] %v550_v42 }
 0x4d4   :  { %553 = vst [vmem:[#allocation9 + $0x18] sm:$0xff] %v551_v44 }
 0x4d5   :  { %566 = dma.vmem_to_hbm [thread:$0]  %s559_s17, 512, %s561_s19, [#allocation5], %s735_s28, %s735_s28, %s736_s29  }
 0x4d6   :  { %731 = dma.done.wait [#allocation5], 512  }
 0x4d7   :  { %732 = vsyncadd [#allocation5], 4294966784 }
 0x4d8   :  { %571 = vsyncpa [#allocation4], 1 }
 0x4d9   :  { %572 = vsyncpa [#allocation7], 1 }
 0x4da   :  { %573 = vsyncpa [#allocation5], 1 }

</bundles_post_ra>
